<compile_context>
chip_gen: v7x
topology: tpu7x:2x2x1
jax: 0.10.0
libtpu: 0.0.40
codegen_flags: <defaults>
</compile_context>

<pallas_src>
import jax
import jax.numpy as jnp
from jax.experimental import pallas as pl
from jax.experimental.pallas import tpu as pltpu

_FEAT_PAD = 128   # lane width for hidden layers / output
_TB_CAP = 1024    # batch tile cap (bf16 slabs + f32 acts stay well under VMEM)


def _round_up(v, m):
    return ((v + m - 1) // m) * m


def _mlp_kernel(num_layers, n_nets, n_obs_pad):
    """Kernel computing the padded MLP for one batch tile, all nets resident."""

    def kernel(x_ref, w_ref, b_ref, o_ref):
        # x_ref: (TB, n_obs_pad)            f32 activation tile (natural obs width)
        # w_ref: (n_nets, L, 128, 128)      bf16 weight slabs (resident)
        # b_ref: (n_nets, L, 1, 128)        f32 bias slabs (resident)
        # o_ref: (n_nets, TB, 128)          bf16 output tile
        x_bf = x_ref[...].astype(jnp.bfloat16)
        for n in range(n_nets):
            # First layer: K = n_obs_pad (static slice of the padded slab).
            w0 = w_ref[n, 0][:n_obs_pad, :]
            h = jnp.dot(x_bf, w0, preferred_element_type=jnp.float32) + b_ref[n, 0]
            h = jnp.maximum(h, 0.0)
            for li in range(1, num_layers):
                h = jnp.dot(h.astype(jnp.bfloat16), w_ref[n, li],
                            preferred_element_type=jnp.float32) + b_ref[n, li]
                if li < num_layers - 1:          # ReLU after every layer but the last
                    h = jnp.maximum(h, 0.0)
            o_ref[n] = h.astype(o_ref.dtype)

    return kernel


def _pack_one_net(params, pad=_FEAT_PAD):
    """Pack per-layer (W, b) of one net into zero-padded contiguous slabs."""
    num_layers = len(params)
    w_slab = jnp.zeros((num_layers, pad, pad), jnp.float32)
    b_slab = jnp.zeros((num_layers, 1, pad), jnp.float32)
    for li, (w, b) in enumerate(params):
        fan_in, fan_out = w.shape
        assert fan_in <= pad and fan_out <= pad, "layer width exceeds lane padding"
        w_slab = w_slab.at[li, :fan_in, :fan_out].set(w.astype(jnp.float32))
        b_slab = b_slab.at[li, 0, :fan_out].set(b.astype(jnp.float32))
    return w_slab, b_slab


def pack_double_dqn_params(*param_lists, pad=_FEAT_PAD):
    """Pre-pack one or more Q-nets into padded slabs.  Do this ONCE at init /
    target-network sync, not per forward call."""
    w_slabs, b_slabs = [], []
    for params in param_lists:
        w, b = _pack_one_net(params, pad)
        w_slabs.append(w)
        b_slabs.append(b)
    w_slabs = jnp.stack(w_slabs).astype(jnp.bfloat16)   # (n_nets, L, 128, 128) bf16
    b_slabs = jnp.stack(b_slabs)                        # (n_nets, L, 1, 128)  f32
    n_obs = param_lists[0][0][0].shape[0]
    n_actions = param_lists[0][-1][0].shape[1]
    return {"w": w_slabs, "b": b_slabs, "n_obs": n_obs, "n_actions": n_actions}


def _pad_x(x, n_obs, tb_cap=_TB_CAP):
    """Pad x to (padded_batch, n_obs_pad) f32 and pick a batch tile size."""
    batch = x.shape[0]
    n_obs_pad = _round_up(max(n_obs, 1), 8)
    padded_batch = _round_up(batch, 16)       # 16: safe sublane tiling for bf16 out
    tb = min(tb_cap, padded_batch)
    padded_batch = _round_up(padded_batch, tb)
    x_pad = jnp.zeros((padded_batch, n_obs_pad), jnp.float32)
    x_pad = x_pad.at[:batch, :n_obs].set(x.astype(jnp.float32))
    return x_pad, tb, n_obs_pad


def _run_mlp(x_pad, w_slabs, b_slabs, tb, n_obs_pad):
    """Run the padded MLP for n_nets resident networks, grid over batch tiles."""
    n_nets, num_layers, pad, _ = w_slabs.shape
    padded_batch = x_pad.shape[0]
    nb = padded_batch // tb

    fn = pl.pallas_call(
        _mlp_kernel(num_layers, n_nets, n_obs_pad),
        out_shape=jax.ShapeDtypeStruct((n_nets, padded_batch, pad), jnp.bfloat16),
        grid_spec=pltpu.PrefetchScalarGridSpec(
            num_scalar_prefetch=0,
            grid=(nb,),
            in_specs=[
                # activations: new batch tile per grid step, natural obs width
                pl.BlockSpec((tb, n_obs_pad), lambda i: (i, 0)),
                # weight / bias slabs: constant index_map -> resident across tiles
                pl.BlockSpec((n_nets, num_layers, pad, pad), lambda i: (0, 0, 0, 0)),
                pl.BlockSpec((n_nets, num_layers, 1, pad), lambda i: (0, 0, 0, 0)),
            ],
            out_specs=pl.BlockSpec((n_nets, tb, pad), lambda i: (0, i, 0)),
        ),
        compiler_params=pltpu.CompilerParams(
            dimension_semantics=("parallel",),   # v7x: 2 TCs split batch tiles
        ),
    )
    return fn(x_pad, w_slabs, b_slabs)


def double_dqn_forward_packed(x, packed):
    """Forward with pre-packed slabs.  Returns a tuple of (batch, n_actions)
    f32 arrays, one per packed network (1 for forward, 2 for online+target)."""
    batch = x.shape[0]
    x_pad, tb, n_obs_pad = _pad_x(x, packed["n_obs"])
    out = _run_mlp(x_pad, packed["w"], packed["b"], tb, n_obs_pad)
    n_actions = packed["n_actions"]
    n_nets = packed["w"].shape[0]
    return tuple(out[n, :batch, :n_actions].astype(jnp.float32) for n in range(n_nets))


def double_dqn_forward(x, params):
    """DoubleDQN.forward: x (batch, n_obs) -> Q-values (batch, n_actions).
    (Convenience wrapper; prefer packing once via pack_double_dqn_params.)"""
    packed = pack_double_dqn_params(params)
    return double_dqn_forward_packed(x, packed)[0]


def double_dqn_forward_pair(x, online_params, target_params):
    """Evaluate online AND target Q-networks in a single pallas_call."""
    packed = pack_double_dqn_params(online_params, target_params)
    q_online, q_target = double_dqn_forward_packed(x, packed)
    return q_online, q_target


def init_double_dqn_params(key, n_observations, n_actions, arch=(2, 32)):
    """Deterministic parameter init mirroring nn.Linear's U(-1/sqrt(fan_in), +)."""
    cl, lw = arch
    dims = [n_observations] + [lw] * (cl + 1) + [n_actions]
    params = []
    for fan_in, fan_out in zip(dims[:-1], dims[1:]):
        key, kw, kb = jax.random.split(key, 3)
        bound = 1.0 / jnp.sqrt(jnp.float32(fan_in))
        w = jax.random.uniform(kw, (fan_in, fan_out), jnp.float32, -bound, bound)
        b = jax.random.uniform(kb, (fan_out,), jnp.float32, -bound, bound)
        params.append((w, b))
    return params


def _reference_forward(x, params):
    """Plain-JAX f32 reference for correctness checking."""
    h = x
    for i, (w, b) in enumerate(params):
        h = h @ w + b
        if i < len(params) - 1:
            h = jnp.maximum(h, 0.0)
    return h


if __name__ == "__main__":
    key = jax.random.PRNGKey(0)

    batch = 8
    n_observations = 16
    n_actions = 4
    arch = (2, 32)  # cl=2 hidden layers of width 32 (module default)

    key, kx, kp, kt = jax.random.split(key, 4)
    x = jax.random.normal(kx, (batch, n_observations), jnp.float32)
    online_params = init_double_dqn_params(kp, n_observations, n_actions, arch=arch)
    target_params = init_double_dqn_params(kt, n_observations, n_actions, arch=arch)

    # bf16-in-MXU kernel vs f32 reference: use a loose-but-tight-enough tolerance.
    TOL = dict(atol=3e-2, rtol=3e-2)

    # Single-network forward (DoubleDQN.forward), packing hoisted.
    packed_single = pack_double_dqn_params(online_params)
    (out,) = double_dqn_forward_packed(x, packed_single)
    out = jax.block_until_ready(out)
    ref = _reference_forward(x, online_params)
    assert out.shape == (batch, n_actions)
    assert jnp.allclose(out, ref, **TOL), "mismatch vs reference"

    # Fused online + target evaluation (TD-target path) in one pallas_call,
    # both weight slabs resident, packing hoisted.
    packed_pair = pack_double_dqn_params(online_params, target_params)
    q_online, q_target = double_dqn_forward_packed(x, packed_pair)
    q_online = jax.block_until_ready(q_online)
    q_target = jax.block_until_ready(q_target)
    assert jnp.allclose(q_online, _reference_forward(x, online_params), **TOL), \
        "online-net mismatch"
    assert jnp.allclose(q_target, _reference_forward(x, target_params), **TOL), \
        "target-net mismatch"

    # Convenience (unpacked) wrappers still work.
    out2 = jax.block_until_ready(double_dqn_forward(x, online_params))
    assert jnp.allclose(out2, ref, **TOL)

    print("KERNEL_OK")
</pallas_src>

<mosaic_0001>
module attributes {stable_mosaic.version = 11 : i64} {
  func.func @kernel(%arg0: i32, %arg1: memref<16x16xf32, #tpu.memory_space<vmem>>, %arg2: memref<1x4x128x128xbf16, #tpu.memory_space<vmem>>, %arg3: memref<1x4x1x128xf32, #tpu.memory_space<vmem>>, %arg4: memref<1x16x128xbf16, #tpu.memory_space<vmem>>) attributes {dimension_semantics = [#tpu.dimension_semantics<parallel>], iteration_bounds = array<i64: 1>, scalar_prefetch = 0 : i64, scratch_operands = 0 : i64, tpu.core_type = #tpu.core_type<tc>, window_params = [{transform_indices = @transform_0, window_bounds = array<i64: 16, 16>}, {pipeline_mode = #tpu.pipeline_mode<synchronous>, transform_indices = @transform_1, window_bounds = array<i64: 1, 4, 128, 128>}, {pipeline_mode = #tpu.pipeline_mode<synchronous>, transform_indices = @transform_2, window_bounds = array<i64: 1, 4, 1, 128>}, {transform_indices = @transform_3, window_bounds = array<i64: 1, 16, 128>}]} {
    %c0 = arith.constant 0 : index
    %c0_0 = arith.constant 0 : index
    %0 = vector.load %arg1[%c0, %c0_0] : memref<16x16xf32, #tpu.memory_space<vmem>>, vector<16x16xf32>
    %1 = arith.truncf %0 : vector<16x16xf32> to vector<16x16xbf16>
    %c0_1 = arith.constant 0 : index
    %c0_2 = arith.constant 0 : index
    %c0_3 = arith.constant 0 : index
    %c0_4 = arith.constant 0 : index
    %2 = vector.load %arg2[%c0_1, %c0_2, %c0_3, %c0_4] : memref<1x4x128x128xbf16, #tpu.memory_space<vmem>>, vector<1x1x128x128xbf16>
    %3 = vector.shape_cast %2 : vector<1x1x128x128xbf16> to vector<128x128xbf16>
    %4 = vector.extract_strided_slice %3 {offsets = [0, 0], sizes = [16, 128], strides = [1, 1]} : vector<128x128xbf16> to vector<16x128xbf16>
    %cst = arith.constant dense<0.000000e+00> : vector<16x128xf32>
    %5 = tpu.matmul %1, %4, %cst {dimension_numbers = #tpu.dot_dimension_numbers<[1], [0], [0], [1], [0, 0, 1, 1], [], []>} : vector<16x16xbf16>, vector<16x128xbf16>, vector<16x128xf32> -> vector<16x128xf32>
    %c0_5 = arith.constant 0 : index
    %c0_6 = arith.constant 0 : index
    %c0_7 = arith.constant 0 : index
    %c0_8 = arith.constant 0 : index
    %6 = vector.load %arg3[%c0_5, %c0_6, %c0_7, %c0_8] : memref<1x4x1x128xf32, #tpu.memory_space<vmem>>, vector<1x1x1x128xf32>
    %7 = vector.shape_cast %6 : vector<1x1x1x128xf32> to vector<1x128xf32>
    %8 = vector.broadcast %7 : vector<1x128xf32> to vector<16x128xf32>
    %9 = arith.addf %5, %8 : vector<16x128xf32>
    %cst_9 = arith.constant 0.000000e+00 : f32
    %10 = vector.broadcast %cst_9 : f32 to vector<16x128xf32>
    %11 = arith.maximumf %9, %10 : vector<16x128xf32>
    %12 = arith.truncf %11 : vector<16x128xf32> to vector<16x128xbf16>
    %c0_10 = arith.constant 0 : index
    %c1 = arith.constant 1 : index
    %c0_11 = arith.constant 0 : index
    %c0_12 = arith.constant 0 : index
    %13 = vector.load %arg2[%c0_10, %c1, %c0_11, %c0_12] : memref<1x4x128x128xbf16, #tpu.memory_space<vmem>>, vector<1x1x128x128xbf16>
    %14 = vector.shape_cast %13 : vector<1x1x128x128xbf16> to vector<128x128xbf16>
    %cst_13 = arith.constant dense<0.000000e+00> : vector<16x128xf32>
    %15 = tpu.matmul %12, %14, %cst_13 {dimension_numbers = #tpu.dot_dimension_numbers<[1], [0], [0], [1], [0, 0, 1, 1], [], []>} : vector<16x128xbf16>, vector<128x128xbf16>, vector<16x128xf32> -> vector<16x128xf32>
    %c0_14 = arith.constant 0 : index
    %c1_15 = arith.constant 1 : index
    %c0_16 = arith.constant 0 : index
    %c0_17 = arith.constant 0 : index
    %16 = vector.load %arg3[%c0_14, %c1_15, %c0_16, %c0_17] : memref<1x4x1x128xf32, #tpu.memory_space<vmem>>, vector<1x1x1x128xf32>
    %17 = vector.shape_cast %16 : vector<1x1x1x128xf32> to vector<1x128xf32>
    %18 = vector.broadcast %17 : vector<1x128xf32> to vector<16x128xf32>
    %19 = arith.addf %15, %18 : vector<16x128xf32>
    %cst_18 = arith.constant 0.000000e+00 : f32
    %20 = vector.broadcast %cst_18 : f32 to vector<16x128xf32>
    %21 = arith.maximumf %19, %20 : vector<16x128xf32>
    %22 = arith.truncf %21 : vector<16x128xf32> to vector<16x128xbf16>
    %c0_19 = arith.constant 0 : index
    %c2 = arith.constant 2 : index
    %c0_20 = arith.constant 0 : index
    %c0_21 = arith.constant 0 : index
    %23 = vector.load %arg2[%c0_19, %c2, %c0_20, %c0_21] : memref<1x4x128x128xbf16, #tpu.memory_space<vmem>>, vector<1x1x128x128xbf16>
    %24 = vector.shape_cast %23 : vector<1x1x128x128xbf16> to vector<128x128xbf16>
    %cst_22 = arith.constant dense<0.000000e+00> : vector<16x128xf32>
    %25 = tpu.matmul %22, %24, %cst_22 {dimension_numbers = #tpu.dot_dimension_numbers<[1], [0], [0], [1], [0, 0, 1, 1], [], []>} : vector<16x128xbf16>, vector<128x128xbf16>, vector<16x128xf32> -> vector<16x128xf32>
    %c0_23 = arith.constant 0 : index
    %c2_24 = arith.constant 2 : index
    %c0_25 = arith.constant 0 : index
    %c0_26 = arith.constant 0 : index
    %26 = vector.load %arg3[%c0_23, %c2_24, %c0_25, %c0_26] : memref<1x4x1x128xf32, #tpu.memory_space<vmem>>, vector<1x1x1x128xf32>
    %27 = vector.shape_cast %26 : vector<1x1x1x128xf32> to vector<1x128xf32>
    %28 = vector.broadcast %27 : vector<1x128xf32> to vector<16x128xf32>
    %29 = arith.addf %25, %28 : vector<16x128xf32>
    %cst_27 = arith.constant 0.000000e+00 : f32
    %30 = vector.broadcast %cst_27 : f32 to vector<16x128xf32>
    %31 = arith.maximumf %29, %30 : vector<16x128xf32>
    %32 = arith.truncf %31 : vector<16x128xf32> to vector<16x128xbf16>
    %c0_28 = arith.constant 0 : index
    %c3 = arith.constant 3 : index
    %c0_29 = arith.constant 0 : index
    %c0_30 = arith.constant 0 : index
    %33 = vector.load %arg2[%c0_28, %c3, %c0_29, %c0_30] : memref<1x4x128x128xbf16, #tpu.memory_space<vmem>>, vector<1x1x128x128xbf16>
    %34 = vector.shape_cast %33 : vector<1x1x128x128xbf16> to vector<128x128xbf16>
    %cst_31 = arith.constant dense<0.000000e+00> : vector<16x128xf32>
    %35 = tpu.matmul %32, %34, %cst_31 {dimension_numbers = #tpu.dot_dimension_numbers<[1], [0], [0], [1], [0, 0, 1, 1], [], []>} : vector<16x128xbf16>, vector<128x128xbf16>, vector<16x128xf32> -> vector<16x128xf32>
    %c0_32 = arith.constant 0 : index
    %c3_33 = arith.constant 3 : index
    %c0_34 = arith.constant 0 : index
    %c0_35 = arith.constant 0 : index
    %36 = vector.load %arg3[%c0_32, %c3_33, %c0_34, %c0_35] : memref<1x4x1x128xf32, #tpu.memory_space<vmem>>, vector<1x1x1x128xf32>
    %37 = vector.shape_cast %36 : vector<1x1x1x128xf32> to vector<1x128xf32>
    %38 = vector.broadcast %37 : vector<1x128xf32> to vector<16x128xf32>
    %39 = arith.addf %35, %38 : vector<16x128xf32>
    %40 = arith.truncf %39 : vector<16x128xf32> to vector<16x128xbf16>
    %c0_36 = arith.constant 0 : index
    %c0_37 = arith.constant 0 : index
    %c0_38 = arith.constant 0 : index
    %41 = vector.load %arg4[%c0_36, %c0_37, %c0_38] : memref<1x16x128xbf16, #tpu.memory_space<vmem>>, vector<1x16x128xbf16>
    %42 = vector.shape_cast %41 : vector<1x16x128xbf16> to vector<16x128xbf16>
    %43 = vector.shape_cast %40 : vector<16x128xbf16> to vector<1x16x128xbf16>
    tpu.vector_store %arg4[%c0_36, %c0_37, %c0_38], %43 {strides = array<i32>} : memref<1x16x128xbf16, #tpu.memory_space<vmem>>, vector<1x16x128xbf16>,
    return
  }
  func.func @transform_0(%arg0: i32) -> (i32, i32) {
    %c0_i32 = arith.constant 0 : i32
    %c0_i32_0 = arith.constant 0 : i32
    return %arg0, %c0_i32 : i32, i32
  }
  func.func @transform_1(%arg0: i32) -> (i32, i32, i32, i32) {
    %c0_i32 = arith.constant 0 : i32
    %c0_i32_0 = arith.constant 0 : i32
    %c0_i32_1 = arith.constant 0 : i32
    %c0_i32_2 = arith.constant 0 : i32
    %c0_i32_3 = arith.constant 0 : i32
    return %c0_i32, %c0_i32_0, %c0_i32_1, %c0_i32_2 : i32, i32, i32, i32
  }
  func.func @transform_2(%arg0: i32) -> (i32, i32, i32, i32) {
    %c0_i32 = arith.constant 0 : i32
    %c0_i32_0 = arith.constant 0 : i32
    %c0_i32_1 = arith.constant 0 : i32
    %c0_i32_2 = arith.constant 0 : i32
    %c0_i32_3 = arith.constant 0 : i32
    return %c0_i32, %c0_i32_0, %c0_i32_1, %c0_i32_2 : i32, i32, i32, i32
  }
  func.func @transform_3(%arg0: i32) -> (i32, i32, i32) {
    %c0_i32 = arith.constant 0 : i32
    %c0_i32_0 = arith.constant 0 : i32
    %c0_i32_1 = arith.constant 0 : i32
    return %c0_i32, %arg0, %c0_i32_0 : i32, i32, i32
  }
}

</mosaic_0001>

<bundles_post_ra>
// kernel: tpu_custom_call.1
= control target key start
LH: loop header
LB: loop body
LE: loop exit
PB: predicated region body
PF: predicated region fallthrough
CT: control target
= control target key end

     0   :  { %8 = vsyncpa [#allocation3], 0  ;;  %s845_s0 = inlined_call_operand.hbm [shape: f32[16,16], index: 0, kind: input, shape index: {}]   ;;  %s846_s1 = inlined_call_operand.hbm [shape: bf16[1,4,128,128], index: 1, kind: input, shape index: {}]   ;;  %s847_s2 = inlined_call_operand.vmem [shape: f32[1,4,1,128], index: 2, kind: input, shape index: {}]   ;;  %s848_s3 = inlined_call_operand.hbm [shape: bf16[1,16,128], index: 3, kind: output, shape index: {}]  }
   0x1   :  { %9 = vsyncpa [#allocation6], 0 }
   0x2   :  { %10 = vsyncpa [#allocation4], 0  ;;  %s729_s12 = smov [#allocation2]   ;;  %s657_s16 = scalar_lea.hbm %s845_s0, 256 }
   0x3   :  { %s16_s13 = sshll.u32 %s729_s12, 4  ;;  %p658_p0 = scmp.ne.s32.totalorder %s845_s0, %s657_s16  ;;  %s17_s13 = int_to_ptr.vmem [resolvable:$true] %s16_s13 }
   0x4   :  { %p661_p1 = scmp.lt.u32.totalorder %s657_s16, %s845_s0 }
   0x6   :  { %p663_p2 = pnand %p661_p1, %p658_p0 }
   0x8   :  { %666 = shalt.err (!%p663_p2)
}
   0x9   :  { %s667_s21 = scalar_lea.vmem %s17_s13, 256  ;;  %p672_p4 = scmp.lt.s32.totalorder %s17_s13, %s17_s13 }
   0xa   :  { %p668_p3 = scmp.ne.s32.totalorder %s17_s13, %s667_s21  ;;  %p673_p5 = scmp.lt.s32.totalorder %s667_s21, %s667_s21 }
   0xc   :  { %p674_p6 = por %p673_p5, %p672_p4 }
   0xe   :  { %p675_p7 = pnand %p674_p6, %p668_p3 }
  0x10   :  { %678 = shalt.err (!%p675_p7)
}
  0x11   :  { %s730_s22 = smov 128   ;;  %s731_s23 = smov 8  }
  0x12   :  { %22 = dma.hbm_to_vmem [thread:$0]  %s845_s0, 256, %s17_s13, [#allocation3], %s730_s22, %s730_s22, %s731_s23  }
  0x13   :  { %s732_s26 = smov [#allocation5]   ;;  %s679_s30 = scalar_lea.hbm %s846_s1, 4096 }
  0x14   :  { %s28_s27 = sshll.u32 %s732_s26, 4  ;;  %p680_p8 = scmp.ne.s32.totalorder %s846_s1, %s679_s30  ;;  %s29_s27 = int_to_ptr.vmem [resolvable:$true] %s28_s27 }
  0x15   :  { %p683_p9 = scmp.lt.u32.totalorder %s679_s30, %s846_s1 }
  0x17   :  { %p685_p10 = pnand %p683_p9, %p680_p8 }
  0x19   :  { %688 = shalt.err (!%p685_p10)
}
  0x1a   :  { %s689_s8 = scalar_lea.vmem %s29_s27, 4096  ;;  %p694_p12 = scmp.lt.s32.totalorder %s29_s27, %s29_s27 }
  0x1b   :  { %p690_p11 = scmp.ne.s32.totalorder %s29_s27, %s689_s8  ;;  %p695_p13 = scmp.lt.s32.totalorder %s689_s8, %s689_s8 }
  0x1d   :  { %p696_p0 = por %p695_p13, %p694_p12 }
  0x1f   :  { %p697_p1 = pnand %p696_p0, %p690_p11 }
  0x21   :  { %700 = shalt.err (!%p697_p1)
}
  0x22   :  { %s733_s0 = smov 64   ;;  %s734_s9 = smov 4  }
  0x23   :  { %34 = dma.hbm_to_vmem [thread:$0]  %s846_s1, 4096, %s29_s27, [#allocation6], %s733_s0, %s733_s0, %s734_s9  }
  0x24   :  { %723 = dma.done.wait [#allocation3], 256  }
  0x25   :  { %724 = vsyncadd [#allocation3], 4294967040 }
  0x26   :  { %725 = dma.done.wait [#allocation6], 4096  }
  0x27   :  { %726 = vsyncadd [#allocation6], 4294963200  ;;  %v735_v0 = vmov 0.0   ;;  %vm736_vm0 = vmmov 0   ;;  %v632_v1 = vld [vmem:[#allocation5] sm:$0xff]   ;;  %v44_v2 = vld [vmem:[#allocation2] sm:$0xff] }
  0x28   :  { %557 = vmatprep.subr.bf16.mxu0 %v735_v0  ;;  %559 = vmatprep.mubr.msk.bf16.mxu0 %vm736_vm0, %v735_v0  ;;  %v45_v3 = vld [vmem:[#allocation2 + $0x8] sm:$0xff]  ;;  %vm62_vm1 = vcmask 130048   ;;  %v633_v5 = vld [vmem:[#allocation5 + $0x40] sm:$0xff]   ;;  %v634_v6 = vld [vmem:[#allocation5 + $0x48] sm:$0xff]   ;;  %s737_s19 = smov [#allocation7]  }
  0x29   :  { %563 = vmatprep.subr.bf16.mxu1 %v735_v0  ;;  %579 = vmatprep.mubr.msk.bf16.mxu1 %vm736_vm0, %v735_v0  ;;  %v46_v4 = vpack.c.bf16 %v45_v3, %v44_v2  ;;  %v635_v7 = vld [vmem:[#allocation5 + $0x50] sm:$0xff]   ;;  %v636_v8 = vld [vmem:[#allocation5 + $0x58] sm:$0xff]   ;;  %v637_v9 = vld [vmem:[#allocation5 + $0x60] sm:$0xff]   ;;  %s473_s20 = sshll.u32 %s737_s19, 4  ;;  %s474_s20 = int_to_ptr.vmem [resolvable:$true] %s473_s20 }
  0x2a   :  { %558 = vmatpush3.bf16.msra.mxu0 %v632_v1  ;;  %564 = vmatpush3.bf16.msra.mxu1 %v633_v5  ;;  %v638_v10 = vld [vmem:[#allocation5 + $0x68] sm:$0xff]   ;;  %v639_v11 = vld [vmem:[#allocation5 + $0x70] sm:$0xff]   ;;  %v640_v12 = vld [vmem:[#allocation5 + $0x78] sm:$0xff]   ;;  %s701_s21 = scalar_lea.vmem %s474_s20, 128  ;;  %p706_p3 = scmp.lt.s32.totalorder %s474_s20, %s474_s20 }
  0x2b   :  { %583 = vmatprep.subr.bf16.mxu0 %v735_v0  ;;  %565 = vmatprep.subr.bf16.mxu1 %v735_v0  ;;  %v641_v13 = vld [vmem:[#allocation5 + $0x80] sm:$0xff]   ;;  %v642_v14 = vld [vmem:[#allocation5 + $0x88] sm:$0xff]   ;;  %v643_v15 = vld [vmem:[#allocation5 + $0x90] sm:$0xff]   ;;  %p702_p2 = scmp.ne.s32.totalorder %s474_s20, %s701_s21  ;;  %p707_p4 = scmp.lt.s32.totalorder %s701_s21, %s701_s21 }
  0x2c   :  { %v644_v16 = vld [vmem:[#allocation5 + $0x98] sm:$0xff]   ;;  %v645_v17 = vld [vmem:[#allocation5 + $0xa0] sm:$0xff]   ;;  %v646_v18 = vld [vmem:[#allocation5 + $0xa8] sm:$0xff]  }
  0x2d   :  { %560 = vmatmul.mubr.msk.bf16.vlgmr.msra.gmra.mrb[0].mxu0 %vm62_vm1, %v46_v4  ;;  %v486_v19 = vld [vmem:[%s847_s2] ss:$0 sm:$0xff]  ;;  %v648_v30 = vld [vmem:[#allocation5 + $0xb8] sm:$0xff]   ;;  %v649_v31 = vld [vmem:[#allocation5 + $0xc0] sm:$0xff]   ;;  %p708_p5 = por %p707_p4, %p706_p3 }
  0x2e   :  { %599 = vmatprep.mubr.msk.bf16.mxu0 %vm736_vm0, %v735_v0  ;;  %566 = vmatpush3.bf16.msra.mxu1 %v634_v6  ;;  %v647_v29 = vld [vmem:[#allocation5 + $0xb0] sm:$0xff]   ;;  %v650_v32 = vld [vmem:[#allocation5 + $0xc8] sm:$0xff]   ;;  %v652_v34 = vld [vmem:[#allocation5 + $0xd8] sm:$0xff]  }
  0x2f   :  { %567 = vmatprep.subr.bf16.mxu1 %v735_v0  ;;  %584 = vmatpush3.bf16.msra.mxu0 %v641_v13  ;;  %v651_v33 = vld [vmem:[#allocation5 + $0xd0] sm:$0xff]   ;;  %v653_v35 = vld [vmem:[#allocation5 + $0xe0] sm:$0xff]   ;;  %v654_v36 = vld [vmem:[#allocation5 + $0xe8] sm:$0xff]   ;;  %p709_p6 = pnand %p708_p5, %p702_p2 }
  0x30   :  { %585 = vmatprep.subr.bf16.mxu0 %v735_v0  ;;  %v490_v37 = vld [vmem:[%s847_s2 + $0x1] ss:$0 sm:$0xff]  ;;  %v656_v48 = vld [vmem:[#allocation5 + $0xf8] sm:$0xff]   ;;  %v500_v49 = vld [vmem:[%s847_s2 + $0x2] ss:$0 sm:$0xff] }
  0x31   :  { %v655_v47 = vld [vmem:[#allocation5 + $0xf0] sm:$0xff]  }
  0x32   :  { %568 = vmatpush3.bf16.msra.mxu1 %v635_v7  ;;  %v510_v59 = vld [vmem:[%s847_s2 + $0x3] ss:$0 sm:$0xff] }
  0x33   :  { %569 = vmatprep.subr.bf16.mxu1 %v735_v0  ;;  %586 = vmatpush3.bf16.msra.mxu0 %v642_v14 }
  0x34   :  { %587 = vmatprep.subr.bf16.mxu0 %v735_v0 }
  0x36   :  { %570 = vmatpush3.bf16.msra.mxu1 %v636_v8 }
  0x37   :  { %571 = vmatprep.subr.bf16.mxu1 %v735_v0  ;;  %588 = vmatpush3.bf16.msra.mxu0 %v643_v15 }
  0x38   :  { %589 = vmatprep.subr.bf16.mxu0 %v735_v0 }
  0x3a   :  { %572 = vmatpush3.bf16.msra.mxu1 %v637_v9 }
  0x3b   :  { %573 = vmatprep.subr.bf16.mxu1 %v735_v0  ;;  %590 = vmatpush3.bf16.msra.mxu0 %v644_v16 }
  0x3c   :  { %591 = vmatprep.subr.bf16.mxu0 %v735_v0 }
  0x3e   :  { %574 = vmatpush3.bf16.msra.mxu1 %v638_v10 }
  0x3f   :  { %575 = vmatprep.subr.bf16.mxu1 %v735_v0  ;;  %592 = vmatpush3.bf16.msra.mxu0 %v645_v17 }
  0x40   :  { %593 = vmatprep.subr.bf16.mxu0 %v735_v0 }
  0x42   :  { %576 = vmatpush3.bf16.msra.mxu1 %v639_v11 }
  0x43   :  { %577 = vmatprep.subr.bf16.mxu1 %v735_v0  ;;  %594 = vmatpush3.bf16.msra.mxu0 %v646_v18 }
  0x44   :  { %595 = vmatprep.subr.bf16.mxu0 %v735_v0 }
  0x46   :  { %578 = vmatpush3.bf16.msra.mxu1 %v640_v12 }
  0x47   :  { %603 = vmatprep.subr.bf16.mxu1 %v735_v0  ;;  %596 = vmatpush3.bf16.msra.mxu0 %v647_v29 }
  0x48   :  { %597 = vmatprep.subr.bf16.mxu0 %v735_v0 }
  0x4b   :  { %598 = vmatpush3.bf16.msra.mxu0 %v648_v30 }
 0x100   :  { %v100_v20 = vpop.f32.mrb[0].mxu0 }
 0x101   :  { %v101_v21 = vadd.f32 %v486_v19, %v100_v20  ;;  %v561_v22 = vpop.f32.mrb[1].mxu0 }
 0x102   :  { %v103_v23 = vpop.f32.mrb[2].mxu0 }
 0x103   :  { %v104_v24 = vadd.f32 %v486_v19, %v103_v23  ;;  %v562_v25 = vpop.f32.mrb[3].mxu0  ;;  %v107_v26 = vmax.f32 %v101_v21, 0.0 }
 0x105   :  { %v108_v27 = vmax.f32 %v104_v24, 0.0 }
 0x107   :  { %v109_v28 = vpack.c.bf16 %v108_v27, %v107_v26 }
 0x109   :  { %580 = vmatmul.mubr.bf16.vlgmr.msra.gmra.mrb[0].mxu1 %v109_v28 }
 0x10a   :  { %619 = vmatprep.mubr.msk.bf16.mxu1 %vm736_vm0, %v735_v0  ;;  %604 = vmatpush3.bf16.msra.mxu1 %v649_v31 }
 0x10b   :  { %605 = vmatprep.subr.bf16.mxu1 %v735_v0 }
 0x10e   :  { %606 = vmatpush3.bf16.msra.mxu1 %v650_v32 }
 0x10f   :  { %607 = vmatprep.subr.bf16.mxu1 %v735_v0 }
 0x112   :  { %608 = vmatpush3.bf16.msra.mxu1 %v651_v33 }
 0x113   :  { %609 = vmatprep.subr.bf16.mxu1 %v735_v0 }
 0x116   :  { %610 = vmatpush3.bf16.msra.mxu1 %v652_v34 }
 0x117   :  { %611 = vmatprep.subr.bf16.mxu1 %v735_v0 }
 0x11a   :  { %612 = vmatpush3.bf16.msra.mxu1 %v653_v35 }
 0x11b   :  { %613 = vmatprep.subr.bf16.mxu1 %v735_v0 }
 0x11e   :  { %614 = vmatpush3.bf16.msra.mxu1 %v654_v36 }
 0x11f   :  { %615 = vmatprep.subr.bf16.mxu1 %v735_v0 }
 0x122   :  { %616 = vmatpush3.bf16.msra.mxu1 %v655_v47 }
 0x123   :  { %617 = vmatprep.subr.bf16.mxu1 %v735_v0 }
 0x126   :  { %618 = vmatpush3.bf16.msra.mxu1 %v656_v48 }
 0x1dc   :  { %v217_v38 = vpop.f32.mrb[0].mxu1 }
 0x1dd   :  { %v218_v39 = vadd.f32 %v490_v37, %v217_v38  ;;  %v581_v40 = vpop.f32.mrb[1].mxu1 }
 0x1de   :  { %v220_v41 = vpop.f32.mrb[2].mxu1 }
 0x1df   :  { %v221_v42 = vadd.f32 %v490_v37, %v220_v41  ;;  %v582_v43 = vpop.f32.mrb[3].mxu1  ;;  %v224_v44 = vmax.f32 %v218_v39, 0.0 }
 0x1e1   :  { %v225_v45 = vmax.f32 %v221_v42, 0.0 }
 0x1e3   :  { %v226_v46 = vpack.c.bf16 %v225_v45, %v224_v44 }
 0x1e5   :  { %600 = vmatmul.mubr.bf16.vlgmr.msra.gmra.mrb[4].mxu0 %v226_v46 }
 0x2b8   :  { %v334_v50 = vpop.f32.mrb[4].mxu0 }
 0x2b9   :  { %v335_v51 = vadd.f32 %v500_v49, %v334_v50  ;;  %v601_v52 = vpop.f32.mrb[5].mxu0 }
 0x2ba   :  { %v337_v53 = vpop.f32.mrb[6].mxu0 }
 0x2bb   :  { %v338_v54 = vadd.f32 %v500_v49, %v337_v53  ;;  %v602_v55 = vpop.f32.mrb[7].mxu0  ;;  %v341_v56 = vmax.f32 %v335_v51, 0.0 }
 0x2bd   :  { %v342_v57 = vmax.f32 %v338_v54, 0.0 }
 0x2bf   :  { %v343_v58 = vpack.c.bf16 %v342_v57, %v341_v56 }
 0x2c1   :  { %620 = vmatmul.mubr.bf16.vlgmr.msra.gmra.mrb[4].mxu1 %v343_v58 }
 0x394   :  { %v451_v60 = vpop.f32.mrb[4].mxu1 }
 0x395   :  { %v621_v61 = vpop.f32.mrb[5].mxu1  ;;  %v452_v63 = vadd.f32 %v510_v59, %v451_v60 }
 0x396   :  { %v454_v62 = vpop.f32.mrb[6].mxu1 }
 0x397   :  { %v455_v0 = vadd.f32 %v510_v59, %v454_v62  ;;  %v622_v1 = vpop.f32.mrb[7].mxu1 }
 0x399   :  { %v526_v2 = vpack.c.bf16 %v455_v0, %v452_v63 }
 0x39b   :  { %527 = vst [vmem:[#allocation7] sm:$0xff] %v526_v2  }
 0x39c   :  { %712 = shalt.err (!%p709_p6)
}
 0x39d   :  { %s713_s23 = scalar_lea.hbm %s848_s3, 128 }
 0x39e   :  { %p714_p7 = scmp.ne.s32.totalorder %s848_s3, %s713_s23  ;;  %p717_p8 = scmp.lt.u32.totalorder %s713_s23, %s848_s3 }
 0x3a0   :  { %p719_p9 = pnand %p717_p8, %p714_p7 }
 0x3a2   :  { %722 = shalt.err (!%p719_p9)
}
 0x3a3   :  { %479 = dma.vmem_to_hbm [thread:$0]  %s474_s20, 128, %s848_s3, [#allocation4], %s733_s0, %s733_s0, %s734_s9  }
 0x3a4   :  { %727 = dma.done.wait [#allocation4], 128  }
 0x3a5   :  { %728 = vsyncadd [#allocation4], 4294967168 }
 0x3a6   :  { %483 = vsyncpa [#allocation3], 1 }
 0x3a7   :  { %484 = vsyncpa [#allocation6], 1 }
 0x3a8   :  { %485 = vsyncpa [#allocation4], 1 }

</bundles_post_ra>
